<compile_context>
chip_gen: v7x
topology: tpu7x:2x2x1
jax: 0.10.0
libtpu: 0.0.40
codegen_flags: <defaults>
</compile_context>

<pallas_src>
import jax
import jax.numpy as jnp
from jax.experimental import pallas as pl
from jax.experimental.pallas import tpu as pltpu


def _make_patch_embed_kernel(with_norm, eps=1e-5):
    """Kernel body.

    Ref shapes:
      x_ref : (1, rb*Wp, K)   K = p*p*C flattened patch pixels (one batch elem)
      w_ref : (K, E)          permuted Conv2d weight
      b_ref : (1, E)          Conv2d bias
      [g_ref, beta_ref : (1, E)]  LayerNorm gamma/beta (only if with_norm)
      o_ref : (1, rb*Wp, E)
    """

    def kernel(*refs):
        if with_norm:
            x_ref, w_ref, b_ref, g_ref, beta_ref, o_ref = refs
        else:
            x_ref, w_ref, b_ref, o_ref = refs

        # Single fused MXU matmul, f32 accumulation.
        acc = jnp.dot(x_ref[0], w_ref[...], preferred_element_type=jnp.float32)
        acc = acc + b_ref[0].astype(jnp.float32)

        if with_norm:
            # Fused single-pass LayerNorm over the embedding axis.
            mean = jnp.mean(acc, axis=-1, keepdims=True)
            msq = jnp.mean(acc * acc, axis=-1, keepdims=True)
            var = msq - mean * mean
            acc = (acc - mean) * jax.lax.rsqrt(var + eps)
            acc = (acc * g_ref[0].astype(jnp.float32)
                   + beta_ref[0].astype(jnp.float32))

        o_ref[0] = acc.astype(o_ref.dtype)

    return kernel


def _pick_rows_per_block(N, Hp, Wp, K, E, x_itemsize, out_itemsize,
                         budget_bytes=12 << 20, min_steps=8):
    """Pick rb (patch-rows per block).

    Models real VMEM occupancy: (8,128) sublane/lane padding, double buffering
    of every BlockSpec'd block, plus the f32 accumulator.  Prefers the largest
    rb that fits the budget while keeping >= min_steps grid steps (so both
    v7x TensorCores and the DMA pipeline have work); otherwise maximizes the
    number of steps among fitting candidates.
    rb must divide Hp, and rb*Wp must be a multiple of 8 (or the full extent)
    to satisfy the (8,128) BlockSpec constraint.
    """
    lane = lambda n: -(-n // 128) * 128
    sub = lambda n: -(-n // 8) * 8

    def vmem_bytes(rb):
        m = rb * Wp
        in_b = sub(m) * lane(K) * x_itemsize        # x block
        out_b = sub(m) * lane(E) * out_itemsize     # output block
        w_b = sub(K) * lane(E) * x_itemsize         # weight (small, resident)
        acc_b = sub(m) * lane(E) * 4                # f32 accumulator
        return 2 * (in_b + out_b + w_b) + acc_b     # x2: double buffering

    cands = [rb for rb in range(1, Hp + 1)
             if Hp % rb == 0 and ((rb * Wp) % 8 == 0 or rb == Hp)]
    fit = [rb for rb in cands if vmem_bytes(rb) <= budget_bytes]
    if not fit:
        return min(cands, key=vmem_bytes)
    enough = [rb for rb in fit if N * (Hp // rb) >= min_steps]
    if enough:
        return max(enough)
    return min(fit)


def patch_embed_forward(x, proj_w, proj_b, patch_size=4, norm_params=None):
    """PatchEmbed.forward.

    x       : (N, C, H, W)
    proj_w  : (E, C, p, p)   Conv2d weight (kernel = stride = p)
    proj_b  : (E,)           Conv2d bias
    norm_params : None (Identity, module default) or (gamma, beta) for LayerNorm(E)

    Returns (tokens, Hp, Wp) with tokens of shape (N, Hp*Wp, E).
    """
    N, C, H, W = x.shape
    p = patch_size
    E = proj_w.shape[0]

    # Right/bottom zero pad to multiples of the patch size (matches F.pad).
    # TODO(synk): for ragged sizes this is an extra HBM pass; a cdiv grid with a
    # masked last block would avoid it.
    pad_h = (-H) % p
    pad_w = (-W) % p
    if pad_h or pad_w:
        x = jnp.pad(x, ((0, 0), (0, 0), (0, pad_h), (0, pad_w)))
        H += pad_h
        W += pad_w
    Hp, Wp = H // p, W // p
    K = p * p * C

    # Single layout pass: (N,C,Hp,p,Wp,p) --(0,2,4,3,5,1)--> (N,Hp,Wp,p,p,C),
    # then free row-major views down to flat patch tokens (N, Hp*Wp, K) where
    # token[n, i*Wp+j, ky*p*C + kx*C + c] == x[n, c, i*p+ky, j*p+kx].
    x_tok = jnp.transpose(x.reshape(N, C, Hp, p, Wp, p),
                          (0, 2, 4, 3, 5, 1)).reshape(N, Hp * Wp, K)

    # Weight (E, C, p, p) -> (ky, kx, C, E) -> (K, E), matching the token order.
    w2 = jnp.transpose(proj_w, (2, 3, 1, 0)).reshape(K, E)
    b2 = proj_b.reshape(1, E)

    rb = _pick_rows_per_block(N, Hp, Wp, K, E,
                              jnp.dtype(x.dtype).itemsize,
                              jnp.dtype(x.dtype).itemsize)
    tokens_per_block = rb * Wp
    grid = (N, Hp // rb)

    in_specs = [
        pl.BlockSpec((1, tokens_per_block, K), lambda n, i: (n, i, 0)),
        pl.BlockSpec((K, E), lambda n, i: (0, 0)),
        pl.BlockSpec((1, E), lambda n, i: (0, 0)),
    ]
    args = [x_tok, w2, b2]

    with_norm = norm_params is not None
    if with_norm:
        gamma, beta = norm_params
        in_specs += [
            pl.BlockSpec((1, E), lambda n, i: (0, 0)),
            pl.BlockSpec((1, E), lambda n, i: (0, 0)),
        ]
        args += [gamma.reshape(1, E), beta.reshape(1, E)]

    tokens = pl.pallas_call(
        _make_patch_embed_kernel(with_norm),
        out_shape=jax.ShapeDtypeStruct((N, Hp * Wp, E), x.dtype),
        grid_spec=pltpu.PrefetchScalarGridSpec(
            num_scalar_prefetch=0,
            grid=grid,
            in_specs=in_specs,
            out_specs=pl.BlockSpec((1, tokens_per_block, E),
                                   lambda n, i: (n, i, 0)),
        ),
        compiler_params=pltpu.CompilerParams(
            dimension_semantics=("parallel", "parallel"),
            vmem_limit_bytes=32 << 20),
    )(*args)

    # Already the flatten(2).transpose(1, 2) token layout of the PyTorch module.
    return tokens, Hp, Wp


if __name__ == "__main__":
    key = jax.random.PRNGKey(0)
    kx, kw, kb = jax.random.split(key, 3)

    # Module defaults: patch_size=4, in_c=3, embed_dim=96, norm_layer=None.
    N, C, H, W = 2, 3, 16, 16
    patch, E = 4, 96

    x = jax.random.normal(kx, (N, C, H, W), jnp.float32)
    proj_w = 0.1 * jax.random.normal(kw, (E, C, patch, patch), jnp.float32)
    proj_b = 0.1 * jax.random.normal(kb, (E,), jnp.float32)

    tokens, Hp, Wp = patch_embed_forward(x, proj_w, proj_b, patch_size=patch)
    tokens = jax.block_until_ready(tokens)

    assert tokens.shape == (N, Hp * Wp, E)
    assert (Hp, Wp) == (H // patch, W // patch)

    # Cross-check against the strided-conv reference (norm_layer=None -> Identity).
    ref = jax.lax.conv_general_dilated(
        x, proj_w, window_strides=(patch, patch), padding="VALID",
        dimension_numbers=("NCHW", "OIHW", "NCHW"),
        precision=jax.lax.Precision.HIGHEST)
    ref = ref + proj_b[None, :, None, None]
    ref = ref.reshape(N, E, Hp * Wp).transpose(0, 2, 1)
    assert jnp.allclose(tokens, ref, atol=1e-4, rtol=1e-4)

    print("KERNEL_OK")
</pallas_src>

<mosaic_0001>
module attributes {stable_mosaic.version = 11 : i64} {
  func.func @kernel(%arg0: i32, %arg1: i32, %arg2: memref<1x8x48xf32, #tpu.memory_space<vmem>>, %arg3: memref<48x96xf32, #tpu.memory_space<vmem>>, %arg4: memref<1x96xf32, #tpu.memory_space<vmem>>, %arg5: memref<1x8x96xf32, #tpu.memory_space<vmem>>) attributes {dimension_semantics = [#tpu.dimension_semantics<parallel>, #tpu.dimension_semantics<parallel>], iteration_bounds = array<i64: 2, 2>, scalar_prefetch = 0 : i64, scratch_operands = 0 : i64, tpu.core_type = #tpu.core_type<tc>, window_params = [{transform_indices = @transform_0, window_bounds = array<i64: 1, 8, 48>}, {pipeline_mode = #tpu.pipeline_mode<synchronous>, transform_indices = @transform_1, window_bounds = array<i64: 48, 96>}, {pipeline_mode = #tpu.pipeline_mode<synchronous>, transform_indices = @transform_2, window_bounds = array<i64: 1, 96>}, {transform_indices = @transform_3, window_bounds = array<i64: 1, 8, 96>}]} {
    %c0 = arith.constant 0 : index
    %c0_0 = arith.constant 0 : index
    %c0_1 = arith.constant 0 : index
    %0 = vector.load %arg2[%c0, %c0_0, %c0_1] : memref<1x8x48xf32, #tpu.memory_space<vmem>>, vector<1x8x48xf32>
    %1 = vector.shape_cast %0 : vector<1x8x48xf32> to vector<8x48xf32>
    %c0_2 = arith.constant 0 : index
    %c0_3 = arith.constant 0 : index
    %2 = vector.load %arg3[%c0_2, %c0_3] : memref<48x96xf32, #tpu.memory_space<vmem>>, vector<48x96xf32>
    %cst = arith.constant dense<0.000000e+00> : vector<8x96xf32>
    %3 = tpu.matmul %1, %2, %cst {dimension_numbers = #tpu.dot_dimension_numbers<[1], [0], [0], [1], [0, 0, 1, 1], [], []>} : vector<8x48xf32>, vector<48x96xf32>, vector<8x96xf32> -> vector<8x96xf32>
    %c0_4 = arith.constant 0 : index
    %c0_5 = arith.constant 0 : index
    %4 = vector.load %arg4[%c0_4, %c0_5] : memref<1x96xf32, #tpu.memory_space<vmem>>, vector<1x96xf32>
    %5 = vector.shape_cast %4 : vector<1x96xf32> to vector<96xf32>
    %6 = vector.shape_cast %5 : vector<96xf32> to vector<1x96xf32>
    %7 = vector.broadcast %6 : vector<1x96xf32> to vector<8x96xf32>
    %8 = arith.addf %3, %7 : vector<8x96xf32>
    %c0_6 = arith.constant 0 : index
    %c0_7 = arith.constant 0 : index
    %c0_8 = arith.constant 0 : index
    %9 = vector.load %arg5[%c0_6, %c0_7, %c0_8] : memref<1x8x96xf32, #tpu.memory_space<vmem>>, vector<1x8x96xf32>
    %10 = vector.shape_cast %9 : vector<1x8x96xf32> to vector<8x96xf32>
    %11 = vector.shape_cast %8 : vector<8x96xf32> to vector<1x8x96xf32>
    tpu.vector_store %arg5[%c0_6, %c0_7, %c0_8], %11 {strides = array<i32>} : memref<1x8x96xf32, #tpu.memory_space<vmem>>, vector<1x8x96xf32>,
    return
  }
  func.func @transform_0(%arg0: i32, %arg1: i32) -> (i32, i32, i32) {
    %c0_i32 = arith.constant 0 : i32
    %c0_i32_0 = arith.constant 0 : i32
    return %arg0, %arg1, %c0_i32 : i32, i32, i32
  }
  func.func @transform_1(%arg0: i32, %arg1: i32) -> (i32, i32) {
    %c0_i32 = arith.constant 0 : i32
    %c0_i32_0 = arith.constant 0 : i32
    %c0_i32_1 = arith.constant 0 : i32
    return %c0_i32, %c0_i32_0 : i32, i32
  }
  func.func @transform_2(%arg0: i32, %arg1: i32) -> (i32, i32) {
    %c0_i32 = arith.constant 0 : i32
    %c0_i32_0 = arith.constant 0 : i32
    %c0_i32_1 = arith.constant 0 : i32
    return %c0_i32, %c0_i32_0 : i32, i32
  }
  func.func @transform_3(%arg0: i32, %arg1: i32) -> (i32, i32, i32) {
    %c0_i32 = arith.constant 0 : i32
    %c0_i32_0 = arith.constant 0 : i32
    return %arg0, %arg1, %c0_i32 : i32, i32, i32
  }
}

</mosaic_0001>

<bundles_post_ra>
// kernel: tpu_custom_call.1
= control target key start
LH: loop header
LB: loop body
LE: loop exit
PB: predicated region body
PF: predicated region fallthrough
CT: control target
= control target key end

     0   :  { %s999_s0 = inlined_call_operand.hbm [shape: f32[2,16,48], index: 0, kind: input, shape index: {}]   ;;  %s1000_s1 = inlined_call_operand.hbm [shape: f32[48,96], index: 1, kind: input, shape index: {}]   ;;  %s1001_s2 = inlined_call_operand.vmem [shape: f32[1,96], index: 2, kind: input, shape index: {}]   ;;  %s1002_s3 = inlined_call_operand.hbm [shape: f32[2,16,96], index: 3, kind: output, shape index: {}]  }
   0x1   :  { %1010 = sst [smem:[#allocation14_spill]] %s1000_s1 }
   0x2   :  { %8 = vsyncpa [#allocation3], 0 }
   0x3   :  { %10 = vsyncpa [#allocation3 + $0x1], 0 }
   0x4   :  { %11 = vsyncpa [#allocation6], 0 }
   0x5   :  { %12 = vsyncpa [#allocation4], 0 }
   0x6   :  { %14 = vsyncpa [#allocation4 + $0x1], 0  ;;  %s754_s12 = smov 0   ;;  %s756_s13 = smov 0  }
   0x7   :  { %s758_s14 = smov 0   ;;  %s760_s15 = smov 0  }
   0x8   :  { %s762_s16 = smov 0   ;;  %s764_s17 = smov 0  }
   0x9   :  { %s766_s18 = smov 0   ;;  %s768_s19 = smov 0  }
   0xa LB: > { %1011 = sst [smem:[#allocation11_spill]] %s696_s12  ;;  %s420_s20 = sadd.s32 4294967295, %s724_s19   ;;  %s724_s19 = sphi %s768_s19, %s20_s19   ;;  %s720_s18 = sphi %s766_s18, %s1038_s18   ;;  %s716_s17 = sphi %s764_s17, %s1037_s17   ;;  %s712_s16 = sphi %s762_s16, %s1036_s16   ;;  %s708_s15 = sphi %s760_s15, %s1035_s15   ;;  %s704_s14 = sphi %s758_s14, %s1034_s14   ;;  %s700_s13 = sphi %s756_s13, %s1033_s13   ;;  %s696_s12 = sphi %s754_s12, %s1032_s12  }
   0xb   : > { %s421_s21 = sadd.s32 4294967294, %s724_s19   ;;  %p54_p0 = scmp.ne.s32.totalorder %s700_s13, %s696_s12 }
   0xc   : > { %p798_p1 = scmp.eq.s32.totalorder %s420_s20, 0  ;;  %p802_p2 = scmp.eq.s32.totalorder %s420_s20, 3 }
   0xd   : > { %p128_p3 = scmp.eq.s32.totalorder %s421_s21, 3  ;;  %p422_p5 = scmp.ge.s32.totalorder %s724_s19, 1 }
   0xe   : > { %s1012_s22 = scalar_select %p798_p1, 1, 0 }
   0xf   : > { %s1013_s23 = scalar_select %p802_p2, 1, 0 }
  0x10   : > { %p808_p4 = por %p798_p1, %p54_p0  ;;  %p813_p6 = por %p128_p3, %p54_p0 }
  0x11   : > { %p135_p7 = scmp.lt.s32.totalorder %s724_s19, 5  ;;  %s726_s27 = smov [#allocation5]  }
  0x12   : > { %s1014_s24 = scalar_select %p808_p4, 1, 0 }
  0x13   : > { %s1015_s25 = scalar_select %p813_p6, 1, 0 }
  0x14   : > { %p818_p8 = pnand %p422_p5, %p135_p7  ;;  %s147_s28 = sshll.u32 %s726_s27, 4  ;;  %s148_s28 = int_to_ptr.vmem [resolvable:$true] %s147_s28 }
  0x15   : > { %1016 = sst [smem:[#allocation12_spill]] %s1015_s25  ;;  %s1019_s1 = sld [smem:[#allocation14_spill]] }
  0x16   : > { %s1017_s26 = scalar_select %p818_p8, 1, 0 }
  0x17   : > { %p478_p9 = pneg %p818_p8 }
  0x19   : > { %p826_p10 = pnand %p478_p9, %p798_p1 }
  0x1b   : > { %s564_s5 = scalar_lea.hbm %s1019_s1, 768  ;;  %p566_p12 = pneg %p826_p10 }
  0x1c   : > { %p565_p11 = scmp.ne.s32.totalorder %s1019_s1, %s564_s5  ;;  %p571_p3 = scmp.lt.u32.totalorder %s564_s5, %s1019_s1 }
  0x1e   : > { %p567_p13 = pnand %p566_p12, %p565_p11 }
  0x20   : > { %p568_p0 = pneg %p567_p13 }
  0x22   : > { %p573_p5 = pnand %p571_p3, %p568_p0 }
  0x24   : > { %576 = shalt.err (!%p573_p5)
}
  0x25   : > { %s577_s10 = scalar_lea.vmem %s148_s28, 768  ;;  %p585_p1 = scmp.lt.s32.totalorder %s148_s28, %s148_s28 }
  0x26   : > { %p578_p7 = scmp.ne.s32.totalorder %s148_s28, %s577_s10  ;;  %p586_p4 = scmp.lt.s32.totalorder %s577_s10, %s577_s10 }
  0x28   : > { %p580_p9 = pnand %p578_p7, %p566_p12  ;;  %p587_p8 = por %p586_p4, %p585_p1 }
  0x2a   : > { %p581_p6 = pneg %p580_p9 }
  0x2c   : > { %p588_p2 = pnand %p587_p8, %p581_p6 }
  0x2e   : > { %591 = shalt.err (!%p588_p2)
}
  0x2f   : > { %s727_s11 = smov 128   ;;  %s728_s20 = smov 8  }
  0x30   : > { %481 = dma.hbm_to_vmem [thread:$0]  (!%p826_p10), %s1019_s1, 768, %s148_s28, [#allocation6], %s727_s11, %s727_s11, %s728_s20  }
  0x31   : > { %s29_s30 = sadd.s32 1, %s716_s17  ;;  %s32_s4 = sadd.s32 1, %s720_s18 }
  0x32   : > { %p30_p1 = scmp.ge.s32.totalorder %s29_s30, 2  ;;  %s41_s5 = sadd.s32 1, %s704_s14 }
  0x33   : > { %p48_p2 = scmp.ne.s32.totalorder %s704_s14, %s700_s13  ;;  %p49_p4 = scmp.eq.s32.totalorder %s724_s19, 0 }
  0x34   : > { %s1040_s30 = smov (%p30_p1, %s29_s30), 0  ;;  %s1042_s4 = smov (!%p30_p1, %s32_s4), %s720_s18 }
  0x35   : > { %1020 = sst [smem:[#allocation13_spill]] %s1040_s30  ;;  %s37_s6 = ssub.s32 %s716_s17, %s1040_s30 }
  0x36   : > { %p34_p6 = scmp.ge.s32.totalorder %s1042_s4, 2  ;;  %p1021_p8 = scmp.ne.s32.totalorder %s1013_s23, 0 }
  0x37   : > { %p863_p10 = por %p49_p4, %p48_p2  ;;  %p491_p12 = scmp.lt.s32.totalorder %s724_s19, 4 }
  0x38   : > { %p859_p11 = por %p1021_p8, %p48_p2  ;;  %s1044_s4 = smov (%p34_p6, %s1042_s4), 0 }
  0x39   : > { %s164_s7 = sand.u32 1, %s704_s14   ;;  %s426_s8 = sshll.u32 %s720_s18, 1 }
  0x3a   : > { %s36_s9 = ssub.s32 %s720_s18, %s1044_s4  ;;  %s425_s11 = sshll.u32 %s164_s7, 3 }
  0x3b   : > { %s38_s10 = sor.u32 %s37_s6, %s36_s9  ;;  %s173_s23 = sadd.s32 %s716_s17, %s426_s8 }
  0x3c   : > { %p39_p13 = scmp.eq.s32.totalorder %s38_s10, 0  ;;  %s168_s20 = scalar_lea.vmem [#allocation2], %s425_s11 }
  0x3d   : > { %s177_s21 = sshll.u32 %s168_s20, 4  ;;  %s427_s1 = sshll.u32 %s173_s23, 7  ;;  %s878_s21 = int_to_ptr.vmem [resolvable:$true] %s177_s21 }
  0x3e   : > { %s876_s27 = scalar_select %p39_p13, %s704_s14, %s41_s5  }
  0x3f   : > { %s883_s12 = scalar_lea.hbm %s999_s0, %s427_s1  ;;  %p889_p0 = pnand %p491_p12, %p863_p10 }
  0x40   : > { %s165_s5 = scalar_lea.sflag [#allocation3], %s164_s7  ;;  %s592_s8 = scalar_lea.hbm %s883_s12, 128 }
  0x41   : > { %p593_p3 = scmp.ne.s32.totalorder %s883_s12, %s592_s8  ;;  %p594_p5 = pneg %p889_p0 }
  0x42   : > { %s597_s30 = scalar_lea.hbm %s999_s0, 512  ;;  %p598_p1 = scmp.lt.u32.totalorder %s883_s12, %s999_s0 }
  0x43   : > { %p595_p7 = pnand %p594_p5, %p593_p3  ;;  %p599_p2 = scmp.lt.u32.totalorder %s597_s30, %s592_s8 }
  0x44   : > { %p601_p6 = scmp.lt.u32.totalorder %s592_s8, %s883_s12 }
  0x45   : > { %p596_p9 = pneg %p595_p7  ;;  %p600_p4 = por %p599_p2, %p598_p1 }
  0x47   : > { %p602_p8 = por %p601_p6, %p600_p4 }
  0x49   : > { %p603_p10 = pnand %p602_p8, %p596_p9 }
  0x4b   : > { %606 = shalt.err (!%p603_p10)
}
  0x4c   : > { %s607_s7 = scalar_lea.vmem %s878_s21, 128  ;;  %s729_s10 = smov [#allocation2]  }
  0x4d   : > { %p608_p12 = scmp.ne.s32.totalorder %s878_s21, %s607_s7  ;;  %s612_s11 = sshll.u32 %s729_s10, 4  ;;  %s613_s11 = int_to_ptr.vmem [resolvable:$false] %s612_s11 }
  0x4e   : > { %s614_s23 = scalar_lea.vmem %s613_s11, 256  ;;  %p615_p7 = scmp.lt.s32.totalorder %s878_s21, %s613_s11 }
  0x4f   : > { %p610_p13 = pnand %p608_p12, %p594_p5  ;;  %p616_p1 = scmp.lt.s32.totalorder %s614_s23, %s607_s7 }
  0x51   : > { %p611_p3 = pneg %p610_p13  ;;  %p617_p2 = por %p616_p1, %p615_p7 }
  0x53   : > { %p618_p4 = pnand %p617_p2, %p611_p3 }
  0x55   : > { %621 = shalt.err (!%p618_p4)
}
  0x56   : > { %485 = dma.hbm_to_vmem [thread:$0]  (!%p889_p0), %s883_s12, 128, %s878_s21, %s165_s5  }
  0x57   : > { %p1025_p9 = scmp.ne.s32.totalorder %s1017_s26, 0 }
  0x58   : > { %s921_s20 = sand.u32 (!%p1025_p9), 1, %s700_s13   ;;  %p1026_p5 = scmp.ne.s32.totalorder (!%p1025_p9), %s1014_s24, 0 }
  0x59   : > { %186 = sbr.rel (%p1025_p9) target bundleno = 343 (0x157), region = 32  ;;  %s429_s8 = sshll.u32 (!%p1025_p9), %s921_s20, 3 }
  0x5a   : > { %s189_s1 = scalar_lea.sflag (!%p1025_p9), [#allocation3], %s921_s20  ;;  %s192_s25 = scalar_lea.vmem (!%p1025_p9), [#allocation2], %s429_s8 }
  0x60   : > { %683 = dma.done.wait (%p1026_p5), %s189_s1, 128  }
  0x61   : > { %685 = vsyncadd (%p1026_p5), %s189_s1, 4294967168  ;;  %p1027_p0 = scmp.ne.s32.totalorder %s1012_s22, 0 }
  0x63   : > { %687 = dma.done.wait (%p1027_p0), [#allocation6], 768  }
  0x64   : > { %689 = vsyncadd (%p1027_p0), [#allocation6], 4294966528  ;;  %v730_v0 = vmov 0.0|0.0   ;;  %vm731_vm0 = vmmov 0   ;;  %v732_v1 = vmov 0.0   ;;  %v220_v2 = vld [vmem:[#allocation5] sm:$0xff] }
  0x65   : > { %461 = vmatprep.subr.bf16.mxu0 %v730_v0  ;;  %458 = vmatprep.mubr.msk.f32.mxu0 %vm731_vm0, %v732_v1  ;;  %v221_v3 = vld [vmem:[#allocation5 + $0x8] sm:$0xff]  ;;  %v222_v4 = vld [vmem:[#allocation5 + $0x10] sm:$0xff]  ;;  %v223_v6 = vld [vmem:[#allocation5 + $0x18] sm:$0xff]  ;;  %vm233_vm1 = vcmask 392192   ;;  %s435_s12 = sshll.u32 %s712_s16, 1  ;;  %s218_s6 = scalar_lea.vmem [#allocation7], %s429_s8 }
  0x66   : > { %v462_v5 = vpack.c.bf16 %v221_v3, %v220_v2  ;;  %v465_v7 = vpack.c.bf16 %v223_v6, %v222_v4  ;;  %v224_v8 = vld [vmem:[#allocation5 + $0x20] sm:$0xff]  ;;  %v225_v9 = vld [vmem:[#allocation5 + $0x28] sm:$0xff]  ;;  %v219_v11 = vld [vmem:[%s192_s25] sm:$0xff]  ;;  %s321_s22 = sadd.s32 %s708_s15, %s435_s12  ;;  %s325_s5 = sshll.u32 %s218_s6, 4  ;;  %vm307_vm2 = vcmask 785408   ;;  %s947_s5 = int_to_ptr.vmem [resolvable:$true] %s325_s5 }
  0x67   : > { %v468_v10 = vpack.c.bf16 %v225_v9, %v224_v8  ;;  %v432_v12 = vld [vmem:[%s1001_s2] ss:$0 sm:$0xff]  ;;  %s436_s21 = sshll.u32 %s321_s22, 7  ;;  %s310_s15 = scalar_lea.sflag [#allocation4], %s921_s20 }
  0x68   : > { %463 = vmatpush3.bf16.msra.mxu0 %v462_v5  ;;  %s945_s9 = scalar_lea.hbm %s1002_s3, %s436_s21  ;;  %s622_s16 = scalar_lea.vmem %s947_s5, 128 }
  0x69   : > { %464 = vmatprep.subr.bf16.mxu0 %v730_v0  ;;  %p623_p6 = scmp.ne.s32.totalorder %s947_s5, %s622_s16  ;;  %s733_s7 = smov [#allocation7]  }
  0x6a   : > { %s626_s10 = sshll.u32 %s733_s7, 4  ;;  %s627_s10 = int_to_ptr.vmem [resolvable:$false] %s626_s10 }
  0x6b   : > { %p624_p8 = pnand %p623_p6, %p859_p11  ;;  %s628_s11 = scalar_lea.vmem %s627_s10, 256 }
  0x6c   : > { %466 = vmatpush3.bf16.msra.mxu0 %v465_v7  ;;  %p629_p12 = scmp.lt.s32.totalorder %s947_s5, %s627_s10  ;;  %p630_p13 = scmp.lt.s32.totalorder %s628_s11, %s622_s16 }
  0x6d   : > { %467 = vmatprep.subr.bf16.mxu0 %v730_v0  ;;  %p625_p10 = pneg %p624_p8 }
  0x6e   : > { %p631_p3 = por %p630_p13, %p629_p12 }
  0x70   : > { %469 = vmatpush3.bf16.msra.mxu0 %v468_v10  ;;  %p632_p7 = pnand %p631_p3, %p625_p10 }
  0x73   : > { %459 = vmatmul.mubr.msk.f32.vlgmr.msra.gmra.mrb[0].mxu0 %vm233_vm1, %v219_v11 }
 0x146   : > { %v303_v13 = vpop.f32.mrb[0].mxu0 }
 0x147   : > { %v304_v14 = vadd.f32 %v432_v12, %v303_v13  ;;  %v460_v15 = vpop.f32.mrb[1].mxu0 }
 0x149   : > { %308 = vst.msk [vmem:[%s218_s6] sm:$0xff] %vm307_vm2, %v304_v14 }
 0x14a   : > { %635 = shalt.err (!%p632_p7)
}
 0x14b   : > { %s636_s23 = scalar_lea.hbm %s945_s9, 128  ;;  %s640_s1 = scalar_lea.hbm %s1002_s3, 512 }
 0x14c   : > { %p637_p1 = scmp.ne.s32.totalorder %s945_s9, %s636_s23  ;;  %p641_p9 = scmp.lt.u32.totalorder %s945_s9, %s1002_s3 }
 0x14d   : > { %p642_p5 = scmp.lt.u32.totalorder %s640_s1, %s636_s23  ;;  %p644_p6 = scmp.lt.u32.totalorder %s636_s23, %s945_s9 }
 0x14e   : > { %p638_p2 = pnand %p637_p1, %p859_p11 }
 0x14f   : > { %p643_p0 = por %p642_p5, %p641_p9 }
 0x150   : > { %p639_p4 = pneg %p638_p2 }
 0x151   : > { %p645_p8 = por %p644_p6, %p643_p0 }
 0x153   : > { %p646_p10 = pnand %p645_p8, %p639_p4 }
 0x155   : > { %649 = shalt.err (!%p646_p10)
}
 0x156   : > { %476 = dma.vmem_to_hbm [thread:$0]  (%p859_p11), %s947_s5, 128, %s945_s9, %s310_s15  }
 0x157 PF: > { %s1028_s22 = sld [smem:[#allocation11_spill]]  ;;  %s1029_s24 = sld [smem:[#allocation12_spill]] }
 0x158   : > { %p493_p12 = scmp.ge.s32.totalorder %s724_s19, 2 }
 0x15d   : > { %s337_s26 = sand.u32 1, %s1028_s22   ;;  %p1030_p13 = scmp.ne.s32.totalorder %s1029_s24, 0 }
 0x15e   : > { %s338_s21 = scalar_lea.sflag [#allocation4], %s337_s26 }
 0x15f   : > { %p487_p3 = pnand %p493_p12, %p1030_p13 }
 0x161   : > { %691 = dma.done.wait (!%p487_p3), %s338_s21, 128  }
 0x162   : > { %693 = vsyncadd (!%p487_p3), %s338_s21, 4294967168  ;;  %s20_s19 = sadd.s32 1, %s724_s19   ;;  %s1031_s29 = sld [smem:[#allocation13_spill]] }
 0x163   : > { %p17_p7 = scmp.ge.s32.totalorder %s20_s19, 6   ;;  %s1032_s12 = smov %s700_s13 }
 0x164   : > { %s1033_s13 = smov %s704_s14  ;;  %s1034_s14 = smov %s876_s27 }
 0x165   : > { %s1035_s15 = smov %s716_s17  ;;  %s1036_s16 = smov %s720_s18 }
 0x166   : > { %s1038_s18 = smov %s1044_s4  ;;  %19 = sbr.rel (!%p17_p7) target bundleno = 10 (0xa), region = 81 }
 0x168   : > { %s1037_s17 = smov %s1031_s29 }
 0x16d   :  { %343 = vsyncpa [#allocation3], 1 }
 0x16e   :  { %345 = vsyncpa [#allocation3 + $0x1], 1 }
 0x16f   :  { %346 = vsyncpa [#allocation6], 1 }
 0x170   :  { %347 = vsyncpa [#allocation4], 1 }
 0x171   :  { %349 = vsyncpa [#allocation4 + $0x1], 1 }

</bundles_post_ra>
